<compile_context>
chip_gen: v5e
topology: v5e:2x2
jax: 0.10.0
libtpu: 0.0.40
codegen_flags: <defaults>
</compile_context>

<pallas_src>
import math

import jax
import jax.numpy as jnp
from jax.experimental import pallas as pl
from jax.experimental.pallas import tpu as pltpu


def _ceil_to(x, m):
    return ((x + m - 1) // m) * m


def _pad2d(a, rows, cols):
    pr = rows - a.shape[0]
    pc = cols - a.shape[1]
    if pr == 0 and pc == 0:
        return a
    return jnp.pad(a, ((0, pr), (0, pc)))


def _tpu_hw_info():
    """Returns (per-core VMEM capacity bytes, #TensorCores/chip), conservatively."""
    vmem_cap = 64 * 2**20      # v7x-sized default = safe lower bound everywhere
    num_tc = 1
    try:
        info = pltpu.get_tpu_info()
        for name in ("vmem_capacity_bytes", "vmem_bytes", "vmem_size_bytes"):
            v = getattr(info, name, None)
            if v:
                vmem_cap = int(v)
                break
        for name in ("num_tensorcores", "tensorcores_per_chip", "num_cores",
                     "core_count"):
            c = getattr(info, name, None)
            if c:
                num_tc = int(c)
                break
    except Exception:
        pass
    try:
        kind = jax.devices()[0].device_kind.lower()
        if "v7" in kind:       # v7x: 2 TensorCores per chip (megacore)
            num_tc = max(num_tc, 2)
    except Exception:
        pass
    return vmem_cap, num_tc


# ---------------------------------------------------------------------------
# Kernels
# ---------------------------------------------------------------------------
def _mlp_kernel_acc_in_out(x_ref, w1_ref, b1_ref, w2_ref, b2_ref, o_ref):
    """One (batch i, hidden j) step of relu(x@W1+b1)@W2+b2, f32 output.

    The output block index (i, 0) is constant across the reduction axis j, so
    the f32 output tile stays resident in VMEM and we accumulate into it
    directly (no scratch accumulator, no final copy).
    """
    j = pl.program_id(1)

    @pl.when(j == 0)
    def _init():
        # Fold the output bias into the accumulator init (free on the j==0 step).
        o_ref[...] = jnp.broadcast_to(b2_ref[...], o_ref.shape)

    # h1_j = relu(x @ W1[:, j-slice] + b1[j-slice]) ; MXU matmul, f32 accumulate.
    h1 = jnp.dot(x_ref[...], w1_ref[...], preferred_element_type=jnp.float32)
    h1 = jnp.maximum(h1 + b1_ref[...], 0.0)

    # out += h1_j @ W2[j-slice, :]
    o_ref[...] += jnp.dot(h1.astype(w2_ref.dtype), w2_ref[...],
                          preferred_element_type=jnp.float32)


def _mlp_kernel_scratch_acc(x_ref, w1_ref, b1_ref, w2_ref, b2_ref, o_ref, acc_ref):
    """Same as above but with an f32 VMEM accumulator (non-f32 output dtype)."""
    j = pl.program_id(1)

    @pl.when(j == 0)
    def _init():
        acc_ref[...] = jnp.broadcast_to(b2_ref[...], acc_ref.shape)

    h1 = jnp.dot(x_ref[...], w1_ref[...], preferred_element_type=jnp.float32)
    h1 = jnp.maximum(h1 + b1_ref[...], 0.0)
    acc_ref[...] += jnp.dot(h1.astype(w2_ref.dtype), w2_ref[...],
                            preferred_element_type=jnp.float32)

    @pl.when(j == pl.num_programs(1) - 1)
    def _finalize():
        o_ref[...] = acc_ref[...].astype(o_ref.dtype)


# ---------------------------------------------------------------------------
# Wrapper
# ---------------------------------------------------------------------------
def mlp_forward(x, w1, b1, w2, b2, *, tile_b=None, tile_h=None,
                compute_dtype=jnp.bfloat16):
    """Fused MLP forward: relu(x @ w1 + b1) @ w2 + b2.

    x:  [B, D_in]
    w1: [D_in, H]      (nn.Linear weight pre-transposed to [in, out])
    b1: [H] or [1, H]
    w2: [H, D_out]
    b2: [D_out] or [1, D_out]
    compute_dtype: MXU operand dtype for x/W1/W2 (default bfloat16 = fast
        path).  Biases, accumulation, epilogue and output stay in f32 / the
        original x dtype.  Pass jnp.float32 for exact-f32 matmuls.
    tile_b / tile_h: optional tile-size hints (treated as upper bounds).
    """
    out_dtype = jnp.dtype(x.dtype)
    B, D_in = x.shape
    H, D_out = w2.shape
    assert w1.shape == (D_in, H), (w1.shape, (D_in, H))

    cdtype = out_dtype if compute_dtype is None else jnp.dtype(compute_dtype)
    x = x.astype(cdtype)
    w1 = jnp.asarray(w1, cdtype)
    w2 = jnp.asarray(w2, cdtype)
    b1 = jnp.asarray(b1, jnp.float32).reshape(1, H)
    b2 = jnp.asarray(b2, jnp.float32).reshape(1, D_out)

    cb = cdtype.itemsize
    ob = out_dtype.itemsize
    acc_in_out = out_dtype == jnp.dtype(jnp.float32)
    sublane = 16 if cb == 2 else 8

    # Lane (last-dim) padding: D_in is the lane dim of x and the MXU K dim of
    # the first matmul; D_out is the lane dim of the output -> both to x128.
    d_in_p = _ceil_to(D_in, 128)
    d_out_p = _ceil_to(D_out, 128)
    h_full = _ceil_to(H, 128)

    # ---- generation-aware VMEM budget ------------------------------------
    vmem_cap, num_tc = _tpu_hw_info()
    budget = min(int(0.80 * vmem_cap), 100 * 2**20)   # ~51 MiB v7x, ~100 MiB v5e/v6e
    fit_budget = int(0.85 * budget)

    def vmem_est(tb, th):
        # Conservative: assumes double-buffered weight slices even on the
        # resident path, so the no-Buffered(1) fallback also fits.
        return (2 * tb * d_in_p * cb              # x tile
                + 2 * d_in_p * th * cb            # W1 slice
                + 2 * th * d_out_p * cb           # W2 slice
                + 2 * th * 4 + 2 * d_out_p * 4    # f32 biases
                + 2 * tb * d_out_p * ob           # out tile
                + (0 if acc_in_out else tb * d_out_p * 4))  # f32 acc scratch

    # ---- tile_h: whole-weights-resident fast path when they fit ----------
    w_full_bytes = (d_in_p * h_full + h_full * d_out_p) * cb + (h_full + d_out_p) * 4
    if tile_h is None:
        tile_h = h_full if 2 * w_full_bytes <= int(0.6 * budget) else min(h_full, 2048)
    tile_h = max(128, min(_ceil_to(tile_h, 128), h_full))

    # ---- tile_b: as large as the VMEM budget allows (<=1024); split small
    # batches only when there are >=2 TensorCores to feed (megacore). -------
    b_al = _ceil_to(B, sublane)
    if tile_b is None:
        tile_b = min(b_al, 1024)
        if num_tc >= 2 and b_al >= 2 * sublane:
            tile_b = min(tile_b, _ceil_to((b_al + 1) // 2, sublane))
    tile_b = max(sublane, _ceil_to(min(tile_b, b_al), sublane))

    # Shrink to fit the budget (shrink whichever tile currently costs more).
    while vmem_est(tile_b, tile_h) > fit_budget and (tile_b > sublane or tile_h > 128):
        h_cost = tile_h * (d_in_p + d_out_p) * cb
        b_cost = tile_b * (d_in_p * cb + d_out_p * (ob + (0 if acc_in_out else 4)))
        if tile_h > 128 and (h_cost >= b_cost or tile_b <= sublane):
            tile_h = max(128, _ceil_to(tile_h // 2, 128))
        else:
            tile_b = max(sublane, _ceil_to(tile_b // 2, sublane))

    # ---- padded shapes & grid ---------------------------------------------
    B_p = _ceil_to(B, tile_b)
    h_p = _ceil_to(H, tile_h)
    nb = B_p // tile_b
    nh = h_p // tile_h
    resident = nh == 1        # weight block indices constant -> fetched once

    x_p = _pad2d(x, B_p, d_in_p)
    w1_p = _pad2d(w1, d_in_p, h_p)
    b1_p = _pad2d(b1, 1, h_p)
    w2_p = _pad2d(w2, h_p, d_out_p)
    b2_p = _pad2d(b2, 1, d_out_p)

    vmem_limit = int(max(budget, 32 * 2**20))

    weight_bytes = (w1_p.size + w2_p.size) * cb + (b1_p.size + b2_p.size) * 4
    cost = pl.CostEstimate(
        flops=2 * B_p * d_in_p * h_p + 2 * B_p * h_p * d_out_p,
        transcendentals=0,
        bytes_accessed=int(x_p.size * cb
                           + (1 if resident else nb) * weight_bytes
                           + B_p * d_out_p * ob))

    if acc_in_out:
        kernel = _mlp_kernel_acc_in_out
        scratch = []
    else:
        kernel = _mlp_kernel_scratch_acc
        scratch = [pltpu.VMEM((tile_b, d_out_p), jnp.float32)]

    def call(use_buffered):
        def spec(shape, index_map, single=False):
            if use_buffered and single:
                # Constant-index block: one buffer is enough.
                return pl.BlockSpec(shape, index_map, pipeline_mode=pl.Buffered(1))
            return pl.BlockSpec(shape, index_map)

        return pl.pallas_call(
            kernel,
            out_shape=jax.ShapeDtypeStruct((B_p, d_out_p), out_dtype),
            grid_spec=pltpu.PrefetchScalarGridSpec(
                num_scalar_prefetch=0,
                grid=(nb, nh),
                in_specs=[
                    spec((tile_b, d_in_p),  lambda i, j: (i, 0)),            # x
                    spec((d_in_p, tile_h),  lambda i, j: (0, j), resident),  # W1
                    spec((1, tile_h),       lambda i, j: (0, j), resident),  # b1
                    spec((tile_h, d_out_p), lambda i, j: (j, 0), resident),  # W2
                    spec((1, d_out_p),      lambda i, j: (0, 0), True),      # b2
                ],
                out_specs=pl.BlockSpec((tile_b, d_out_p), lambda i, j: (i, 0)),
                scratch_shapes=scratch,
            ),
            compiler_params=pltpu.CompilerParams(
                dimension_semantics=("parallel", "arbitrary"),
                vmem_limit_bytes=vmem_limit,
            ),
            cost_estimate=cost,
        )(x_p, w1_p, b1_p, w2_p, b2_p)

    try:
        out_p = call(use_buffered=hasattr(pl, "Buffered"))
    except Exception:
        # pipeline_mode / Buffered(1) not supported by this jax build -> retry
        # with plain (double-buffered) BlockSpecs; VMEM estimate already
        # assumed double-buffering, so the same tiling still fits.
        out_p = call(use_buffered=False)

    return out_p[:B, :D_out]


# ---------------------------------------------------------------------------
# Reference & init (PyTorch-style)
# ---------------------------------------------------------------------------
def init_mlp_params(key, input_dim, hidden_dim, out_dim, dtype=jnp.float32):
    """Mimics PyTorch nn.Linear default init (uniform +-1/sqrt(fan_in))."""
    k1, k2, k3, k4 = jax.random.split(key, 4)
    bound1 = 1.0 / math.sqrt(input_dim)
    bound2 = 1.0 / math.sqrt(hidden_dim)
    # Weights stored pre-transposed to [in, out].
    w1 = jax.random.uniform(k1, (input_dim, hidden_dim), dtype, -bound1, bound1)
    b1 = jax.random.uniform(k2, (hidden_dim,), dtype, -bound1, bound1)
    w2 = jax.random.uniform(k3, (hidden_dim, out_dim), dtype, -bound2, bound2)
    b2 = jax.random.uniform(k4, (out_dim,), dtype, -bound2, bound2)
    return w1, b1, w2, b2


def mlp_reference(x, w1, b1, w2, b2):
    h1 = jnp.maximum(
        jnp.dot(x.astype(jnp.float32), w1, precision=jax.lax.Precision.HIGHEST)
        + b1.reshape(1, -1), 0.0)
    return jnp.dot(h1, w2, precision=jax.lax.Precision.HIGHEST) + b2.reshape(1, -1)


if __name__ == "__main__":
    key = jax.random.PRNGKey(0)

    # --- small shapes consistent with the module ---------------------------
    B, D_in, H, D_out = 8, 16, 32, 8
    kx, kp = jax.random.split(key)
    x = jax.random.normal(kx, (B, D_in), jnp.float32)
    w1, b1, w2, b2 = init_mlp_params(kp, D_in, H, D_out)
    ref = mlp_reference(x, w1, b1, w2, b2)

    # exact-f32 MXU path
    out = jax.block_until_ready(
        mlp_forward(x, w1, b1, w2, b2, compute_dtype=jnp.float32))
    assert out.shape == (B, D_out)
    assert jnp.allclose(out, ref, atol=1e-5, rtol=1e-5), \
        float(jnp.max(jnp.abs(out - ref)))

    # default fast path: bf16 MXU operands, f32 accumulate / epilogue
    out_bf = jax.block_until_ready(mlp_forward(x, w1, b1, w2, b2))
    assert out_bf.shape == (B, D_out)
    assert jnp.allclose(out_bf, ref, atol=5e-2, rtol=5e-2), \
        float(jnp.max(jnp.abs(out_bf - ref)))

    # --- larger, non-aligned shapes: batch tiling, H-reduction (nh > 1),
    # f32 output accumulated directly into o_ref ----------------------------
    B2, D_in2, H2, D_out2 = 300, 200, 500, 250
    kx2, kp2 = jax.random.split(jax.random.PRNGKey(1))
    x2 = jax.random.normal(kx2, (B2, D_in2), jnp.float32)
    p2 = init_mlp_params(kp2, D_in2, H2, D_out2)
    ref2 = mlp_reference(x2, *p2)

    out2 = jax.block_until_ready(
        mlp_forward(x2, *p2, tile_b=128, tile_h=256, compute_dtype=jnp.float32))
    assert out2.shape == (B2, D_out2)
    assert jnp.allclose(out2, ref2, atol=2e-3, rtol=2e-3), \
        float(jnp.max(jnp.abs(out2 - ref2)))

    # auto tiling: whole-weights-resident fast path, bf16 MXU operands
    out3 = jax.block_until_ready(mlp_forward(x2, *p2))
    assert out3.shape == (B2, D_out2)
    assert jnp.allclose(out3, ref2, atol=1e-1, rtol=1e-1), \
        float(jnp.max(jnp.abs(out3 - ref2)))

    # bf16 output dtype -> exercises the f32-scratch-accumulator kernel
    out4 = jax.block_until_ready(
        mlp_forward(x2.astype(jnp.bfloat16), *p2, tile_h=256))
    assert out4.shape == (B2, D_out2) and out4.dtype == jnp.bfloat16
    assert jnp.allclose(out4.astype(jnp.float32), ref2, atol=1e-1, rtol=1e-1), \
        float(jnp.max(jnp.abs(out4.astype(jnp.float32) - ref2)))

    print("KERNEL_OK")
</pallas_src>

<mosaic_0001>
module attributes {stable_mosaic.version = 11 : i64} {
  func.func @_mlp_kernel_acc_in_out(%arg0: i32, %arg1: i32, %arg2: memref<8x128xf32, #tpu.memory_space<vmem>>, %arg3: memref<128x128xf32, #tpu.memory_space<vmem>>, %arg4: memref<1x128xf32, #tpu.memory_space<vmem>>, %arg5: memref<128x128xf32, #tpu.memory_space<vmem>>, %arg6: memref<1x128xf32, #tpu.memory_space<vmem>>, %arg7: memref<8x128xf32, #tpu.memory_space<vmem>>) attributes {dimension_semantics = [#tpu.dimension_semantics<parallel>, #tpu.dimension_semantics<arbitrary>], iteration_bounds = array<i64: 1, 1>, scalar_prefetch = 0 : i64, scratch_operands = 0 : i64, tpu.core_type = #tpu.core_type<tc>, window_params = [{transform_indices = @transform_0, window_bounds = array<i64: 8, 128>}, {pipeline_mode = #tpu.pipeline_mode<synchronous>, transform_indices = @transform_1, window_bounds = array<i64: 128, 128>}, {pipeline_mode = #tpu.pipeline_mode<synchronous>, transform_indices = @transform_2, window_bounds = array<i64: 1, 128>}, {pipeline_mode = #tpu.pipeline_mode<synchronous>, transform_indices = @transform_3, window_bounds = array<i64: 128, 128>}, {pipeline_mode = #tpu.pipeline_mode<synchronous>, transform_indices = @transform_4, window_bounds = array<i64: 1, 128>}, {transform_indices = @transform_5, window_bounds = array<i64: 8, 128>}]} {
    %c0_i32 = arith.constant 0 : i32
    %0 = arith.cmpi eq, %arg1, %c0_i32 : i32
    %1 = arith.extui %0 : i1 to i32
    %c0_i32_0 = arith.constant 0 : i32
    %2 = arith.cmpi ne, %1, %c0_i32_0 : i32
    scf.if %2 {
      %c0_14 = arith.constant 0 : index
      %c0_15 = arith.constant 0 : index
      %16 = vector.load %arg6[%c0_14, %c0_15] : memref<1x128xf32, #tpu.memory_space<vmem>>, vector<1x128xf32>
      %17 = vector.shape_cast %16 : vector<1x128xf32> to vector<1x128xf32>
      %18 = vector.broadcast %17 : vector<1x128xf32> to vector<8x128xf32>
      %c0_16 = arith.constant 0 : index
      %c0_17 = arith.constant 0 : index
      %19 = vector.load %arg7[%c0_16, %c0_17] : memref<8x128xf32, #tpu.memory_space<vmem>>, vector<8x128xf32>
      tpu.vector_store %arg7[%c0_16, %c0_17], %18 {strides = array<i32>} : memref<8x128xf32, #tpu.memory_space<vmem>>, vector<8x128xf32>,
    } else {
    }
    %c0 = arith.constant 0 : index
    %c0_1 = arith.constant 0 : index
    %3 = vector.load %arg2[%c0, %c0_1] : memref<8x128xf32, #tpu.memory_space<vmem>>, vector<8x128xf32>
    %c0_2 = arith.constant 0 : index
    %c0_3 = arith.constant 0 : index
    %4 = vector.load %arg3[%c0_2, %c0_3] : memref<128x128xf32, #tpu.memory_space<vmem>>, vector<128x128xf32>
    %cst = arith.constant dense<0.000000e+00> : vector<8x128xf32>
    %5 = tpu.matmul %3, %4, %cst {dimension_numbers = #tpu.dot_dimension_numbers<[1], [0], [0], [1], [0, 0, 1, 1], [], []>} : vector<8x128xf32>, vector<128x128xf32>, vector<8x128xf32> -> vector<8x128xf32>
    %c0_4 = arith.constant 0 : index
    %c0_5 = arith.constant 0 : index
    %6 = vector.load %arg4[%c0_4, %c0_5] : memref<1x128xf32, #tpu.memory_space<vmem>>, vector<1x128xf32>
    %7 = vector.broadcast %6 : vector<1x128xf32> to vector<8x128xf32>
    %8 = arith.addf %5, %7 : vector<8x128xf32>
    %cst_6 = arith.constant 0.000000e+00 : f32
    %9 = vector.broadcast %cst_6 : f32 to vector<8x128xf32>
    %10 = arith.maximumf %8, %9 : vector<8x128xf32>
    %c0_7 = arith.constant 0 : index
    %c0_8 = arith.constant 0 : index
    %11 = vector.load %arg7[%c0_7, %c0_8] : memref<8x128xf32, #tpu.memory_space<vmem>>, vector<8x128xf32>
    %c0_9 = arith.constant 0 : index
    %c0_10 = arith.constant 0 : index
    %12 = vector.load %arg5[%c0_9, %c0_10] : memref<128x128xf32, #tpu.memory_space<vmem>>, vector<128x128xf32>
    %cst_11 = arith.constant dense<0.000000e+00> : vector<8x128xf32>
    %13 = tpu.matmul %10, %12, %cst_11 {dimension_numbers = #tpu.dot_dimension_numbers<[1], [0], [0], [1], [0, 0, 1, 1], [], []>} : vector<8x128xf32>, vector<128x128xf32>, vector<8x128xf32> -> vector<8x128xf32>
    %14 = arith.addf %11, %13 : vector<8x128xf32>
    %c0_12 = arith.constant 0 : index
    %c0_13 = arith.constant 0 : index
    %15 = vector.load %arg7[%c0_12, %c0_13] : memref<8x128xf32, #tpu.memory_space<vmem>>, vector<8x128xf32>
    tpu.vector_store %arg7[%c0_12, %c0_13], %14 {strides = array<i32>} : memref<8x128xf32, #tpu.memory_space<vmem>>, vector<8x128xf32>,
    return
  }
  func.func @transform_0(%arg0: i32, %arg1: i32) -> (i32, i32) {
    %c0_i32 = arith.constant 0 : i32
    %c0_i32_0 = arith.constant 0 : i32
    return %arg0, %c0_i32 : i32, i32
  }
  func.func @transform_1(%arg0: i32, %arg1: i32) -> (i32, i32) {
    %c0_i32 = arith.constant 0 : i32
    %c0_i32_0 = arith.constant 0 : i32
    return %c0_i32, %arg1 : i32, i32
  }
  func.func @transform_2(%arg0: i32, %arg1: i32) -> (i32, i32) {
    %c0_i32 = arith.constant 0 : i32
    %c0_i32_0 = arith.constant 0 : i32
    return %c0_i32, %arg1 : i32, i32
  }
  func.func @transform_3(%arg0: i32, %arg1: i32) -> (i32, i32) {
    %c0_i32 = arith.constant 0 : i32
    %c0_i32_0 = arith.constant 0 : i32
    return %arg1, %c0_i32 : i32, i32
  }
  func.func @transform_4(%arg0: i32, %arg1: i32) -> (i32, i32) {
    %c0_i32 = arith.constant 0 : i32
    %c0_i32_0 = arith.constant 0 : i32
    %c0_i32_1 = arith.constant 0 : i32
    return %c0_i32, %c0_i32_0 : i32, i32
  }
  func.func @transform_5(%arg0: i32, %arg1: i32) -> (i32, i32) {
    %c0_i32 = arith.constant 0 : i32
    %c0_i32_0 = arith.constant 0 : i32
    return %arg0, %c0_i32 : i32, i32
  }
}

module attributes {stable_mosaic.version = 11 : i64} {
  func.func @_mlp_kernel_acc_in_out(%arg0: i32, %arg1: i32, %arg2: memref<8x128xf32, #tpu.memory_space<vmem>>, %arg3: memref<128x128xf32, #tpu.memory_space<vmem>>, %arg4: memref<1x128xf32, #tpu.memory_space<vmem>>, %arg5: memref<128x128xf32, #tpu.memory_space<vmem>>, %arg6: memref<1x128xf32, #tpu.memory_space<vmem>>, %arg7: memref<8x128xf32, #tpu.memory_space<vmem>>) attributes {dimension_semantics = [#tpu.dimension_semantics<parallel>, #tpu.dimension_semantics<arbitrary>], iteration_bounds = array<i64: 1, 1>, scalar_prefetch = 0 : i64, scratch_operands = 0 : i64, tpu.core_type = #tpu.core_type<tc>, window_params = [{transform_indices = @transform_0, window_bounds = array<i64: 8, 128>}, {transform_indices = @transform_1, window_bounds = array<i64: 128, 128>}, {transform_indices = @transform_2, window_bounds = array<i64: 1, 128>}, {transform_indices = @transform_3, window_bounds = array<i64: 128, 128>}, {pipeline_mode = #tpu.pipeline_mode<synchronous>, transform_indices = @transform_4, window_bounds = array<i64: 1, 128>}, {transform_indices = @transform_5, window_bounds = array<i64: 8, 128>}]} {
    %c0_i32 = arith.constant 0 : i32
    %0 = arith.cmpi eq, %arg1, %c0_i32 : i32
    %1 = arith.extui %0 : i1 to i32
    %c0_i32_0 = arith.constant 0 : i32
    %2 = arith.cmpi ne, %1, %c0_i32_0 : i32
    scf.if %2 {
      %c0_14 = arith.constant 0 : index
      %c0_15 = arith.constant 0 : index
      %16 = vector.load %arg6[%c0_14, %c0_15] : memref<1x128xf32, #tpu.memory_space<vmem>>, vector<1x128xf32>
      %17 = vector.shape_cast %16 : vector<1x128xf32> to vector<1x128xf32>
      %18 = vector.broadcast %17 : vector<1x128xf32> to vector<8x128xf32>
      %c0_16 = arith.constant 0 : index
      %c0_17 = arith.constant 0 : index
      %19 = vector.load %arg7[%c0_16, %c0_17] : memref<8x128xf32, #tpu.memory_space<vmem>>, vector<8x128xf32>
      tpu.vector_store %arg7[%c0_16, %c0_17], %18 {strides = array<i32>} : memref<8x128xf32, #tpu.memory_space<vmem>>, vector<8x128xf32>,
    } else {
    }
    %c0 = arith.constant 0 : index
    %c0_1 = arith.constant 0 : index
    %3 = vector.load %arg2[%c0, %c0_1] : memref<8x128xf32, #tpu.memory_space<vmem>>, vector<8x128xf32>
    %c0_2 = arith.constant 0 : index
    %c0_3 = arith.constant 0 : index
    %4 = vector.load %arg3[%c0_2, %c0_3] : memref<128x128xf32, #tpu.memory_space<vmem>>, vector<128x128xf32>
    %cst = arith.constant dense<0.000000e+00> : vector<8x128xf32>
    %5 = tpu.matmul %3, %4, %cst {dimension_numbers = #tpu.dot_dimension_numbers<[1], [0], [0], [1], [0, 0, 1, 1], [], []>} : vector<8x128xf32>, vector<128x128xf32>, vector<8x128xf32> -> vector<8x128xf32>
    %c0_4 = arith.constant 0 : index
    %c0_5 = arith.constant 0 : index
    %6 = vector.load %arg4[%c0_4, %c0_5] : memref<1x128xf32, #tpu.memory_space<vmem>>, vector<1x128xf32>
    %7 = vector.broadcast %6 : vector<1x128xf32> to vector<8x128xf32>
    %8 = arith.addf %5, %7 : vector<8x128xf32>
    %cst_6 = arith.constant 0.000000e+00 : f32
    %9 = vector.broadcast %cst_6 : f32 to vector<8x128xf32>
    %10 = arith.maximumf %8, %9 : vector<8x128xf32>
    %c0_7 = arith.constant 0 : index
    %c0_8 = arith.constant 0 : index
    %11 = vector.load %arg7[%c0_7, %c0_8] : memref<8x128xf32, #tpu.memory_space<vmem>>, vector<8x128xf32>
    %c0_9 = arith.constant 0 : index
    %c0_10 = arith.constant 0 : index
    %12 = vector.load %arg5[%c0_9, %c0_10] : memref<128x128xf32, #tpu.memory_space<vmem>>, vector<128x128xf32>
    %cst_11 = arith.constant dense<0.000000e+00> : vector<8x128xf32>
    %13 = tpu.matmul %10, %12, %cst_11 {dimension_numbers = #tpu.dot_dimension_numbers<[1], [0], [0], [1], [0, 0, 1, 1], [], []>} : vector<8x128xf32>, vector<128x128xf32>, vector<8x128xf32> -> vector<8x128xf32>
    %14 = arith.addf %11, %13 : vector<8x128xf32>
    %c0_12 = arith.constant 0 : index
    %c0_13 = arith.constant 0 : index
    %15 = vector.load %arg7[%c0_12, %c0_13] : memref<8x128xf32, #tpu.memory_space<vmem>>, vector<8x128xf32>
    tpu.vector_store %arg7[%c0_12, %c0_13], %14 {strides = array<i32>} : memref<8x128xf32, #tpu.memory_space<vmem>>, vector<8x128xf32>,
    return
  }
  func.func @transform_0(%arg0: i32, %arg1: i32) -> (i32, i32) {
    %c0_i32 = arith.constant 0 : i32
    %c0_i32_0 = arith.constant 0 : i32
    return %arg0, %c0_i32 : i32, i32
  }
  func.func @transform_1(%arg0: i32, %arg1: i32) -> (i32, i32) {
    %c0_i32 = arith.constant 0 : i32
    %c0_i32_0 = arith.constant 0 : i32
    return %c0_i32, %arg1 : i32, i32
  }
  func.func @transform_2(%arg0: i32, %arg1: i32) -> (i32, i32) {
    %c0_i32 = arith.constant 0 : i32
    %c0_i32_0 = arith.constant 0 : i32
    return %c0_i32, %arg1 : i32, i32
  }
  func.func @transform_3(%arg0: i32, %arg1: i32) -> (i32, i32) {
    %c0_i32 = arith.constant 0 : i32
    %c0_i32_0 = arith.constant 0 : i32
    return %arg1, %c0_i32 : i32, i32
  }
  func.func @transform_4(%arg0: i32, %arg1: i32) -> (i32, i32) {
    %c0_i32 = arith.constant 0 : i32
    %c0_i32_0 = arith.constant 0 : i32
    %c0_i32_1 = arith.constant 0 : i32
    return %c0_i32, %c0_i32_0 : i32, i32
  }
  func.func @transform_5(%arg0: i32, %arg1: i32) -> (i32, i32) {
    %c0_i32 = arith.constant 0 : i32
    %c0_i32_0 = arith.constant 0 : i32
    return %arg0, %c0_i32 : i32, i32
  }
}

</mosaic_0001>

<bundles_post_ra>
// kernel: tpu_custom_call.1
= control target key start
LH: loop header
LB: loop body
LE: loop exit
PB: predicated region body
PF: predicated region fallthrough
CT: control target
= control target key end

     0   :  { %10 = vsyncpa [#allocation3], 0  ;;  %s338_s0 = inlined_call_operand.hbm [shape: f32[8,128], index: 0, kind: input, shape index: {}]   ;;  %s339_s1 = inlined_call_operand.hbm [shape: f32[128,128], index: 1, kind: input, shape index: {}]   ;;  %s340_s2 = inlined_call_operand.vmem [shape: f32[1,128], index: 2, kind: input, shape index: {}]   ;;  %s341_s3 = inlined_call_operand.hbm [shape: f32[128,128], index: 3, kind: input, shape index: {}]   ;;  %s342_s4 = inlined_call_operand.vmem [shape: f32[1,128], index: 4, kind: input, shape index: {}]   ;;  %s343_s5 = inlined_call_operand.hbm [shape: f32[8,128], index: 5, kind: output, shape index: {}]  }
   0x1   :  { %11 = vsyncpa [#allocation6], 0  ;;  %s28_s20 = sshll.u32 %s339_s1, 4  ;;  %s29_s20 = int_to_ptr.hbm [resolvable:$true] %s28_s20 }
   0x2   :  { %12 = vsyncpa [#allocation4], 0  ;;  %s284_s21 = smov [#allocation5]   ;;  %s18_s25 = sshll.u32 %s338_s0, 4  ;;  %s19_s25 = int_to_ptr.hbm [resolvable:$true] %s18_s25 }
   0x3   :  { %s30_s22 = sshll.u32 %s284_s21, 4  ;;  %s285_s26 = smov 128   ;;  %s31_s22 = int_to_ptr.vmem [resolvable:$true] %s30_s22 }
   0x4   :  { %s286_s27 = smov 8   ;;  %s287_s28 = smov [#allocation2]  }
   0x5   :  { %36 = dma.hbm_to_vmem [thread:$0]  %s29_s20, 2048, %s31_s22, [#allocation6], %s285_s26, %s285_s26, %s286_s27  }
   0x6   :  { %s20_s29 = sshll.u32 %s287_s28, 4  ;;  %s43_s7 = sshll.u32 %s341_s3, 4  ;;  %s21_s29 = int_to_ptr.vmem [resolvable:$true] %s20_s29  ;;  %s44_s7 = int_to_ptr.hbm [resolvable:$true] %s43_s7 }
   0x7   :  { %23 = dma.hbm_to_vmem [thread:$0]  %s19_s25, 128, %s21_s29, [#allocation3]  }
   0x8   :  { %s288_s1 = smov [#allocation7]  }
   0x9   :  { %s45_s8 = sshll.u32 %s288_s1, 4  ;;  %s46_s8 = int_to_ptr.vmem [resolvable:$true] %s45_s8 }
   0xa   :  { %51 = dma.hbm_to_vmem [thread:$0]  %s44_s7, 2048, %s46_s8, [#allocation6], %s285_s26, %s285_s26, %s286_s27  }
   0xb   :  { %278 = dma.done.wait [#allocation3], 128  }
   0xc   :  { %279 = vsyncadd [#allocation3], 4294967168 }
   0xd   :  { %280 = dma.done.wait [#allocation6], 4096  }
   0xe   :  { %281 = vsyncadd [#allocation6], 4294963200  ;;  %v91_v0 = vld [vmem:[#allocation5 + $0x78] sm:$0xff]  ;;  %v90_v1 = vld [vmem:[#allocation5 + $0x70] sm:$0xff]  ;;  %s289_s11 = smov [#allocation8]   ;;  %s163_s15 = sshll.u32 %s343_s5, 4  ;;  %s164_s15 = int_to_ptr.hbm [resolvable:$true] %s163_s15 }
   0xf   :  { %96 = vmatpush.msra.mxu0 %v91_v0  ;;  %v89_v2 = vld [vmem:[#allocation5 + $0x68] sm:$0xff]  ;;  %v88_v3 = vld [vmem:[#allocation5 + $0x60] sm:$0xff]  ;;  %v133_v4 = vld [vmem:[#allocation7 + $0x78] sm:$0xff]  ;;  %s161_s12 = sshll.u32 %s289_s11, 4  ;;  %s162_s12 = int_to_ptr.vmem [resolvable:$true] %s161_s12 }
  0x10   :  { %v87_v5 = vld [vmem:[#allocation5 + $0x58] sm:$0xff]  ;;  %134 = vmatpush.msra.mxu1 %v133_v4  ;;  %v132_v6 = vld [vmem:[#allocation7 + $0x70] sm:$0xff]  ;;  %v131_v7 = vld [vmem:[#allocation7 + $0x68] sm:$0xff] }
  0x11   :  { %97 = vmatpush.msra.mxu0 %v90_v1  ;;  %v86_v8 = vld [vmem:[#allocation5 + $0x50] sm:$0xff]  ;;  %v130_v9 = vld [vmem:[#allocation7 + $0x60] sm:$0xff]  ;;  %v85_v10 = vld [vmem:[#allocation5 + $0x48] sm:$0xff] }
  0x12   :  { %135 = vmatpush.msra.mxu1 %v132_v6  ;;  %v129_v11 = vld [vmem:[#allocation7 + $0x58] sm:$0xff]  ;;  %v84_v12 = vld [vmem:[#allocation5 + $0x40] sm:$0xff]  ;;  %v128_v13 = vld [vmem:[#allocation7 + $0x50] sm:$0xff] }
  0x13   :  { %98 = vmatpush.msra.mxu0 %v89_v2  ;;  %v83_v14 = vld [vmem:[#allocation5 + $0x38] sm:$0xff]  ;;  %v127_v15 = vld [vmem:[#allocation7 + $0x48] sm:$0xff]  ;;  %v82_v16 = vld [vmem:[#allocation5 + $0x30] sm:$0xff] }
  0x14   :  { %136 = vmatpush.msra.mxu1 %v131_v7  ;;  %v126_v17 = vld [vmem:[#allocation7 + $0x40] sm:$0xff]  ;;  %v81_v18 = vld [vmem:[#allocation5 + $0x28] sm:$0xff]  ;;  %v125_v19 = vld [vmem:[#allocation7 + $0x38] sm:$0xff] }
  0x15   :  { %99 = vmatpush.msra.mxu0 %v88_v3  ;;  %v80_v20 = vld [vmem:[#allocation5 + $0x20] sm:$0xff]  ;;  %v124_v21 = vld [vmem:[#allocation7 + $0x30] sm:$0xff]  ;;  %v79_v22 = vld [vmem:[#allocation5 + $0x18] sm:$0xff] }
  0x16   :  { %137 = vmatpush.msra.mxu1 %v130_v9  ;;  %v123_v23 = vld [vmem:[#allocation7 + $0x28] sm:$0xff]  ;;  %v78_v24 = vld [vmem:[#allocation5 + $0x10] sm:$0xff]  ;;  %v122_v25 = vld [vmem:[#allocation7 + $0x20] sm:$0xff] }
  0x17   :  { %100 = vmatpush.msra.mxu0 %v87_v5  ;;  %v77_v26 = vld [vmem:[#allocation5 + $0x8] sm:$0xff]  ;;  %v121_v27 = vld [vmem:[#allocation7 + $0x18] sm:$0xff]  ;;  %v76_v28 = vld [vmem:[#allocation5] sm:$0xff] }
  0x18   :  { %138 = vmatpush.msra.mxu1 %v129_v11  ;;  %v75_v29 = vld [vmem:[#allocation2] sm:$0xff]  ;;  %v120_v30 = vld [vmem:[#allocation7 + $0x10] sm:$0xff]  ;;  %v119_v31 = vld [vmem:[#allocation7 + $0x8] sm:$0xff] }
  0x19   :  { %101 = vmatpush.msra.mxu0 %v86_v8  ;;  %v118_v32 = vld [vmem:[#allocation7] sm:$0xff]  ;;  %v180_v33 = vld [vmem:[%s340_s2] ss:$0 sm:$0xff] }
  0x1a   :  { %139 = vmatpush.msra.mxu1 %v128_v13  ;;  %v181_v37 = vld [vmem:[%s342_s4] ss:$0 sm:$0xff] }
  0x1b   :  { %102 = vmatpush.msra.mxu0 %v85_v10 }
  0x1c   :  { %140 = vmatpush.msra.mxu1 %v127_v15 }
  0x1d   :  { %103 = vmatpush.msra.mxu0 %v84_v12 }
  0x1e   :  { %141 = vmatpush.msra.mxu1 %v126_v17 }
  0x1f   :  { %104 = vmatpush.msra.mxu0 %v83_v14 }
  0x20   :  { %142 = vmatpush.msra.mxu1 %v125_v19 }
  0x21   :  { %105 = vmatpush.msra.mxu0 %v82_v16 }
  0x22   :  { %143 = vmatpush.msra.mxu1 %v124_v21 }
  0x23   :  { %106 = vmatpush.msra.mxu0 %v81_v18 }
  0x24   :  { %144 = vmatpush.msra.mxu1 %v123_v23 }
  0x25   :  { %107 = vmatpush.msra.mxu0 %v80_v20 }
  0x26   :  { %145 = vmatpush.msra.mxu1 %v122_v25 }
  0x27   :  { %108 = vmatpush.msra.mxu0 %v79_v22 }
  0x28   :  { %146 = vmatpush.msra.mxu1 %v121_v27 }
  0x29   :  { %109 = vmatpush.msra.mxu0 %v78_v24 }
  0x2a   :  { %147 = vmatpush.msra.mxu1 %v120_v30 }
  0x2b   :  { %110 = vmatpush.msra.mxu0 %v77_v26 }
  0x2c   :  { %148 = vmatpush.msra.mxu1 %v119_v31 }
  0x2d   :  { %111 = vmatpush.msra.mxu0 %v76_v28 }
  0x2e   :  { %112 = vmatmul.f32.vlgmr.msra.gmra.mxu0 %v75_v29  ;;  %149 = vmatpush.msra.mxu1 %v118_v32 }
  0xab   :  { %v113_v34 = vpop.f32.mrf.mxu0 }
  0xac   :  { %v114_v35 = vadd.f32 %v180_v33, %v113_v34 }
  0xae   :  { %v116_v36 = vmax.f32 %v114_v35, 0.0 }
  0xb0   :  { %150 = vmatmul.f32.vlgmr.msra.gmra.mxu1 %v116_v36 }
 0x12d   :  { %v151_v38 = vpop.f32.mrf.mxu1 }
 0x12e   :  { %v154_v39 = vadd.f32 %v181_v37, %v151_v38 }
 0x130   :  { %155 = vst [vmem:[#allocation8] sm:$0xff] %v154_v39 }
 0x131   :  { %166 = dma.vmem_to_hbm [thread:$0]  %s162_s12, 128, %s164_s15, [#allocation4]  }
 0x132   :  { %282 = dma.done.wait [#allocation4], 128  }
 0x133   :  { %283 = vsyncadd [#allocation4], 4294967168 }
 0x134   :  { %171 = vsyncpa [#allocation3], 1 }
 0x135   :  { %172 = vsyncpa [#allocation6], 1 }
 0x136   :  { %173 = vsyncpa [#allocation4], 1 }

// kernel: tpu_custom_call.1
= control target key start
LH: loop header
LB: loop body
LE: loop exit
PB: predicated region body
PF: predicated region fallthrough
CT: control target
= control target key end

     0   :  { %10 = vsyncpa [#allocation3], 0  ;;  %s338_s0 = inlined_call_operand.hbm [shape: f32[8,128], index: 0, kind: input, shape index: {}]   ;;  %s339_s1 = inlined_call_operand.hbm [shape: f32[128,128], index: 1, kind: input, shape index: {}]   ;;  %s340_s2 = inlined_call_operand.vmem [shape: f32[1,128], index: 2, kind: input, shape index: {}]   ;;  %s341_s3 = inlined_call_operand.hbm [shape: f32[128,128], index: 3, kind: input, shape index: {}]   ;;  %s342_s4 = inlined_call_operand.vmem [shape: f32[1,128], index: 4, kind: input, shape index: {}]   ;;  %s343_s5 = inlined_call_operand.hbm [shape: f32[8,128], index: 5, kind: output, shape index: {}]  }
   0x1   :  { %11 = vsyncpa [#allocation6], 0  ;;  %s28_s20 = sshll.u32 %s339_s1, 4  ;;  %s29_s20 = int_to_ptr.hbm [resolvable:$true] %s28_s20 }
   0x2   :  { %12 = vsyncpa [#allocation4], 0  ;;  %s284_s21 = smov [#allocation5]   ;;  %s18_s25 = sshll.u32 %s338_s0, 4  ;;  %s19_s25 = int_to_ptr.hbm [resolvable:$true] %s18_s25 }
   0x3   :  { %s30_s22 = sshll.u32 %s284_s21, 4  ;;  %s285_s26 = smov 128   ;;  %s31_s22 = int_to_ptr.vmem [resolvable:$true] %s30_s22 }
   0x4   :  { %s286_s27 = smov 8   ;;  %s287_s28 = smov [#allocation2]  }
   0x5   :  { %36 = dma.hbm_to_vmem [thread:$0]  %s29_s20, 2048, %s31_s22, [#allocation6], %s285_s26, %s285_s26, %s286_s27  }
   0x6   :  { %s20_s29 = sshll.u32 %s287_s28, 4  ;;  %s43_s7 = sshll.u32 %s341_s3, 4  ;;  %s21_s29 = int_to_ptr.vmem [resolvable:$true] %s20_s29  ;;  %s44_s7 = int_to_ptr.hbm [resolvable:$true] %s43_s7 }
   0x7   :  { %23 = dma.hbm_to_vmem [thread:$0]  %s19_s25, 128, %s21_s29, [#allocation3]  }
   0x8   :  { %s288_s1 = smov [#allocation7]  }
   0x9   :  { %s45_s8 = sshll.u32 %s288_s1, 4  ;;  %s46_s8 = int_to_ptr.vmem [resolvable:$true] %s45_s8 }
   0xa   :  { %51 = dma.hbm_to_vmem [thread:$0]  %s44_s7, 2048, %s46_s8, [#allocation6], %s285_s26, %s285_s26, %s286_s27  }
   0xb   :  { %278 = dma.done.wait [#allocation3], 128  }
   0xc   :  { %279 = vsyncadd [#allocation3], 4294967168 }
   0xd   :  { %280 = dma.done.wait [#allocation6], 4096  }
   0xe   :  { %281 = vsyncadd [#allocation6], 4294963200  ;;  %v91_v0 = vld [vmem:[#allocation5 + $0x78] sm:$0xff]  ;;  %v90_v1 = vld [vmem:[#allocation5 + $0x70] sm:$0xff]  ;;  %s289_s11 = smov [#allocation8]   ;;  %s163_s15 = sshll.u32 %s343_s5, 4  ;;  %s164_s15 = int_to_ptr.hbm [resolvable:$true] %s163_s15 }
   0xf   :  { %96 = vmatpush.msra.mxu0 %v91_v0  ;;  %v89_v2 = vld [vmem:[#allocation5 + $0x68] sm:$0xff]  ;;  %v88_v3 = vld [vmem:[#allocation5 + $0x60] sm:$0xff]  ;;  %v133_v4 = vld [vmem:[#allocation7 + $0x78] sm:$0xff]  ;;  %s161_s12 = sshll.u32 %s289_s11, 4  ;;  %s162_s12 = int_to_ptr.vmem [resolvable:$true] %s161_s12 }
  0x10   :  { %v87_v5 = vld [vmem:[#allocation5 + $0x58] sm:$0xff]  ;;  %134 = vmatpush.msra.mxu1 %v133_v4  ;;  %v132_v6 = vld [vmem:[#allocation7 + $0x70] sm:$0xff]  ;;  %v131_v7 = vld [vmem:[#allocation7 + $0x68] sm:$0xff] }
  0x11   :  { %97 = vmatpush.msra.mxu0 %v90_v1  ;;  %v86_v8 = vld [vmem:[#allocation5 + $0x50] sm:$0xff]  ;;  %v130_v9 = vld [vmem:[#allocation7 + $0x60] sm:$0xff]  ;;  %v85_v10 = vld [vmem:[#allocation5 + $0x48] sm:$0xff] }
  0x12   :  { %135 = vmatpush.msra.mxu1 %v132_v6  ;;  %v129_v11 = vld [vmem:[#allocation7 + $0x58] sm:$0xff]  ;;  %v84_v12 = vld [vmem:[#allocation5 + $0x40] sm:$0xff]  ;;  %v128_v13 = vld [vmem:[#allocation7 + $0x50] sm:$0xff] }
  0x13   :  { %98 = vmatpush.msra.mxu0 %v89_v2  ;;  %v83_v14 = vld [vmem:[#allocation5 + $0x38] sm:$0xff]  ;;  %v127_v15 = vld [vmem:[#allocation7 + $0x48] sm:$0xff]  ;;  %v82_v16 = vld [vmem:[#allocation5 + $0x30] sm:$0xff] }
  0x14   :  { %136 = vmatpush.msra.mxu1 %v131_v7  ;;  %v126_v17 = vld [vmem:[#allocation7 + $0x40] sm:$0xff]  ;;  %v81_v18 = vld [vmem:[#allocation5 + $0x28] sm:$0xff]  ;;  %v125_v19 = vld [vmem:[#allocation7 + $0x38] sm:$0xff] }
  0x15   :  { %99 = vmatpush.msra.mxu0 %v88_v3  ;;  %v80_v20 = vld [vmem:[#allocation5 + $0x20] sm:$0xff]  ;;  %v124_v21 = vld [vmem:[#allocation7 + $0x30] sm:$0xff]  ;;  %v79_v22 = vld [vmem:[#allocation5 + $0x18] sm:$0xff] }
  0x16   :  { %137 = vmatpush.msra.mxu1 %v130_v9  ;;  %v123_v23 = vld [vmem:[#allocation7 + $0x28] sm:$0xff]  ;;  %v78_v24 = vld [vmem:[#allocation5 + $0x10] sm:$0xff]  ;;  %v122_v25 = vld [vmem:[#allocation7 + $0x20] sm:$0xff] }
  0x17   :  { %100 = vmatpush.msra.mxu0 %v87_v5  ;;  %v77_v26 = vld [vmem:[#allocation5 + $0x8] sm:$0xff]  ;;  %v121_v27 = vld [vmem:[#allocation7 + $0x18] sm:$0xff]  ;;  %v76_v28 = vld [vmem:[#allocation5] sm:$0xff] }
  0x18   :  { %138 = vmatpush.msra.mxu1 %v129_v11  ;;  %v75_v29 = vld [vmem:[#allocation2] sm:$0xff]  ;;  %v120_v30 = vld [vmem:[#allocation7 + $0x10] sm:$0xff]  ;;  %v119_v31 = vld [vmem:[#allocation7 + $0x8] sm:$0xff] }
  0x19   :  { %101 = vmatpush.msra.mxu0 %v86_v8  ;;  %v118_v32 = vld [vmem:[#allocation7] sm:$0xff]  ;;  %v180_v33 = vld [vmem:[%s340_s2] ss:$0 sm:$0xff] }
  0x1a   :  { %139 = vmatpush.msra.mxu1 %v128_v13  ;;  %v181_v37 = vld [vmem:[%s342_s4] ss:$0 sm:$0xff] }
  0x1b   :  { %102 = vmatpush.msra.mxu0 %v85_v10 }
  0x1c   :  { %140 = vmatpush.msra.mxu1 %v127_v15 }
  0x1d   :  { %103 = vmatpush.msra.mxu0 %v84_v12 }
  0x1e   :  { %141 = vmatpush.msra.mxu1 %v126_v17 }
  0x1f   :  { %104 = vmatpush.msra.mxu0 %v83_v14 }
  0x20   :  { %142 = vmatpush.msra.mxu1 %v125_v19 }
  0x21   :  { %105 = vmatpush.msra.mxu0 %v82_v16 }
  0x22   :  { %143 = vmatpush.msra.mxu1 %v124_v21 }
  0x23   :  { %106 = vmatpush.msra.mxu0 %v81_v18 }
  0x24   :  { %144 = vmatpush.msra.mxu1 %v123_v23 }
  0x25   :  { %107 = vmatpush.msra.mxu0 %v80_v20 }
  0x26   :  { %145 = vmatpush.msra.mxu1 %v122_v25 }
  0x27   :  { %108 = vmatpush.msra.mxu0 %v79_v22 }
  0x28   :  { %146 = vmatpush.msra.mxu1 %v121_v27 }
  0x29   :  { %109 = vmatpush.msra.mxu0 %v78_v24 }
  0x2a   :  { %147 = vmatpush.msra.mxu1 %v120_v30 }
  0x2b   :  { %110 = vmatpush.msra.mxu0 %v77_v26 }
  0x2c   :  { %148 = vmatpush.msra.mxu1 %v119_v31 }
  0x2d   :  { %111 = vmatpush.msra.mxu0 %v76_v28 }
  0x2e   :  { %112 = vmatmul.f32.vlgmr.msra.gmra.mxu0 %v75_v29  ;;  %149 = vmatpush.msra.mxu1 %v118_v32 }
  0xab   :  { %v113_v34 = vpop.f32.mrf.mxu0 }
  0xac   :  { %v114_v35 = vadd.f32 %v180_v33, %v113_v34 }
  0xae   :  { %v116_v36 = vmax.f32 %v114_v35, 0.0 }
  0xb0   :  { %150 = vmatmul.f32.vlgmr.msra.gmra.mxu1 %v116_v36 }
 0x12d   :  { %v151_v38 = vpop.f32.mrf.mxu1 }
 0x12e   :  { %v154_v39 = vadd.f32 %v181_v37, %v151_v38 }
 0x130   :  { %155 = vst [vmem:[#allocation8] sm:$0xff] %v154_v39 }
 0x131   :  { %166 = dma.vmem_to_hbm [thread:$0]  %s162_s12, 128, %s164_s15, [#allocation4]  }
 0x132   :  { %282 = dma.done.wait [#allocation4], 128  }
 0x133   :  { %283 = vsyncadd [#allocation4], 4294967168 }
 0x134   :  { %171 = vsyncpa [#allocation3], 1 }
 0x135   :  { %172 = vsyncpa [#allocation6], 1 }
 0x136   :  { %173 = vsyncpa [#allocation4], 1 }

</bundles_post_ra>
